<compile_context>
chip_gen: v7x
topology: tpu7x:2x2x1
jax: 0.10.0
libtpu: 0.0.40
codegen_flags: <defaults>
</compile_context>

<pallas_src>
import jax
import jax.numpy as jnp
from jax.experimental import pallas as pl
from jax.experimental.pallas import tpu as pltpu


def _linear_relu_kernel(x_ref, w_ref, b_ref, o_ref):
    # x_ref: (TM, d_in)   w_ref: (d_in, d_out_p)   b_ref: (1, d_out_p)
    # o_ref: (TM, d_out_p)
    y = jnp.dot(
        x_ref[...],
        w_ref[...],
        preferred_element_type=jnp.float32,
        precision=jax.lax.Precision.HIGHEST,
    )
    y = y + b_ref[...]                      # VPU bias add (hidden under output DMA)
    o_ref[...] = jnp.maximum(y, 0.0).astype(o_ref.dtype)


def _round_up(x, n):
    return ((x + n - 1) // n) * n


def _choose_tm(m, tm_target, min_steps=4):
    """Row-tile size: big enough to amortize the ~0.35 us per-step cost, but
    never so big that the grid degenerates below ~min_steps steps (keeps the
    pipeline double-buffered and both v7x TensorCores busy)."""
    tm = min(tm_target, _round_up(pl.cdiv(m, min_steps), 8))
    return max(tm, 8)


def positional_encoding_forward(x, w, b, *, tm_target=2048):
    """relu(x @ w + b).  x: (..., d_in), w: (d_in, d_out), b: (d_out,) -> (..., d_out)."""
    orig_shape = x.shape
    d_in = orig_shape[-1]
    d_out = w.shape[1]

    # ---- wrapper-side layout plumbing (plain JAX glue) ----
    x2d = x.reshape(-1, d_in)
    m = x2d.shape[0]

    # Lane-dense output: pad d_out up to a multiple of 128 if needed
    # (embed_dim=512 is already aligned, so this is a no-op in practice).
    d_out_p = _round_up(d_out, 128)
    if d_out_p != d_out:
        w = jnp.pad(w, ((0, 0), (0, d_out_p - d_out)))
        b = jnp.pad(b, (0, d_out_p - d_out))
    b2d = b.reshape(1, d_out_p)

    tm = _choose_tm(m, tm_target)
    grid = (pl.cdiv(m, tm),)          # partial last block: reads padded, writes dropped

    # VMEM budget per grid step (f32, double-buffered):
    #   out: 2 * tm * d_out_p * 4      x (lane-padded to 128): 2 * tm * 128 * 4
    #   + W/bias + f32 dot temp.  TM=2048, d_out_p=512 -> ~16 MiB; give headroom.
    vmem_limit = 48 * 1024 * 1024

    cost = pl.CostEstimate(
        flops=2 * m * d_in * d_out_p,
        bytes_accessed=4 * (m * d_in + d_in * d_out_p + d_out_p + m * d_out_p),
        transcendentals=0,
    )

    out = pl.pallas_call(
        _linear_relu_kernel,
        out_shape=jax.ShapeDtypeStruct((m, d_out_p), x.dtype),
        grid_spec=pl.GridSpec(
            grid=grid,
            in_specs=[
                pl.BlockSpec((tm, d_in), lambda i: (i, 0)),        # streamed rows of x
                pl.BlockSpec((d_in, d_out_p), lambda i: (0, 0)),   # W resident in VMEM
                pl.BlockSpec((1, d_out_p), lambda i: (0, 0)),      # bias resident in VMEM
            ],
            out_specs=pl.BlockSpec((tm, d_out_p), lambda i: (i, 0)),
        ),
        compiler_params=pltpu.CompilerParams(
            dimension_semantics=("parallel",),   # shard row tiles across TCs (v7x)
            vmem_limit_bytes=vmem_limit,
        ),
        cost_estimate=cost,
    )(x2d, w, b2d)

    if d_out_p != d_out:
        out = out[:, :d_out]
    return out.reshape(*orig_shape[:-1], d_out)


if __name__ == "__main__":
    # Small shapes consistent with the module: feature-last input, real
    # input_dim / embed_dim from the spec.
    batch, seq = 2, 8
    input_dim = 13
    embed_dim = 512

    key = jax.random.PRNGKey(0)
    kx, kw, kb = jax.random.split(key, 3)

    # Deterministic parameter init (mimics nn.Linear's U(-1/sqrt(in), 1/sqrt(in))).
    bound = 1.0 / (input_dim ** 0.5)
    w = jax.random.uniform(kw, (input_dim, embed_dim), jnp.float32, -bound, bound)
    b = jax.random.uniform(kb, (embed_dim,), jnp.float32, -bound, bound)

    x = jax.random.normal(kx, (batch, seq, input_dim), jnp.float32)

    y = positional_encoding_forward(x, w, b)
    jax.block_until_ready(y)

    # Reference check in plain JAX (same precision as the kernel's dot).
    y_ref = jnp.maximum(
        jnp.dot(x, w, precision=jax.lax.Precision.HIGHEST) + b, 0.0
    )
    assert y.shape == (batch, seq, embed_dim)
    assert jnp.allclose(y, y_ref, atol=1e-5, rtol=1e-5)

    print("KERNEL_OK")
</pallas_src>

<mosaic_0001>
module attributes {stable_mosaic.version = 11 : i64} {
  func.func @_linear_relu_kernel(%arg0: i32, %arg1: memref<8x13xf32, #tpu.memory_space<vmem>>, %arg2: memref<13x512xf32, #tpu.memory_space<vmem>>, %arg3: memref<1x512xf32, #tpu.memory_space<vmem>>, %arg4: memref<8x512xf32, #tpu.memory_space<vmem>>) attributes {dimension_semantics = [#tpu.dimension_semantics<parallel>], iteration_bounds = array<i64: 2>, scalar_prefetch = 0 : i64, scratch_operands = 0 : i64, tpu.core_type = #tpu.core_type<tc>, window_params = [{transform_indices = @transform_0, window_bounds = array<i64: 8, 13>}, {pipeline_mode = #tpu.pipeline_mode<synchronous>, transform_indices = @transform_1, window_bounds = array<i64: 13, 512>}, {pipeline_mode = #tpu.pipeline_mode<synchronous>, transform_indices = @transform_2, window_bounds = array<i64: 1, 512>}, {transform_indices = @transform_3, window_bounds = array<i64: 8, 512>}]} {
    %c0 = arith.constant 0 : index
    %c0_0 = arith.constant 0 : index
    %0 = vector.load %arg1[%c0, %c0_0] : memref<8x13xf32, #tpu.memory_space<vmem>>, vector<8x13xf32>
    %c0_1 = arith.constant 0 : index
    %c0_2 = arith.constant 0 : index
    %1 = vector.load %arg2[%c0_1, %c0_2] : memref<13x512xf32, #tpu.memory_space<vmem>>, vector<13x512xf32>
    %cst = arith.constant dense<0.000000e+00> : vector<8x512xf32>
    %2 = tpu.matmul %0, %1, %cst {dimension_numbers = #tpu.dot_dimension_numbers<[1], [0], [0], [1], [0, 0, 1, 1], [], []>, precision = #tpu.contract_precision<fp32>} : vector<8x13xf32>, vector<13x512xf32>, vector<8x512xf32> -> vector<8x512xf32>
    %c0_3 = arith.constant 0 : index
    %c0_4 = arith.constant 0 : index
    %3 = vector.load %arg3[%c0_3, %c0_4] : memref<1x512xf32, #tpu.memory_space<vmem>>, vector<1x512xf32>
    %4 = vector.broadcast %3 : vector<1x512xf32> to vector<8x512xf32>
    %5 = arith.addf %2, %4 : vector<8x512xf32>
    %cst_5 = arith.constant 0.000000e+00 : f32
    %6 = vector.broadcast %cst_5 : f32 to vector<8x512xf32>
    %7 = arith.maximumf %5, %6 : vector<8x512xf32>
    %c0_6 = arith.constant 0 : index
    %c0_7 = arith.constant 0 : index
    %8 = vector.load %arg4[%c0_6, %c0_7] : memref<8x512xf32, #tpu.memory_space<vmem>>, vector<8x512xf32>
    tpu.vector_store %arg4[%c0_6, %c0_7], %7 {strides = array<i32>} : memref<8x512xf32, #tpu.memory_space<vmem>>, vector<8x512xf32>,
    return
  }
  func.func @transform_0(%arg0: i32) -> (i32, i32) {
    %c0_i32 = arith.constant 0 : i32
    %c0_i32_0 = arith.constant 0 : i32
    return %arg0, %c0_i32 : i32, i32
  }
  func.func @transform_1(%arg0: i32) -> (i32, i32) {
    %c0_i32 = arith.constant 0 : i32
    %c0_i32_0 = arith.constant 0 : i32
    %c0_i32_1 = arith.constant 0 : i32
    return %c0_i32, %c0_i32_0 : i32, i32
  }
  func.func @transform_2(%arg0: i32) -> (i32, i32) {
    %c0_i32 = arith.constant 0 : i32
    %c0_i32_0 = arith.constant 0 : i32
    %c0_i32_1 = arith.constant 0 : i32
    return %c0_i32, %c0_i32_0 : i32, i32
  }
  func.func @transform_3(%arg0: i32) -> (i32, i32) {
    %c0_i32 = arith.constant 0 : i32
    %c0_i32_0 = arith.constant 0 : i32
    return %arg0, %c0_i32 : i32, i32
  }
}

</mosaic_0001>

<bundles_post_ra>
// kernel: tpu_custom_call.1
= control target key start
LH: loop header
LB: loop body
LE: loop exit
PB: predicated region body
PF: predicated region fallthrough
CT: control target
= control target key end

     0   :  { %8 = vsyncpa [#allocation3], 0  ;;  %s1924_s0 = inlined_call_operand.hbm [shape: f32[16,13], index: 0, kind: input, shape index: {}]   ;;  %s1925_s1 = inlined_call_operand.hbm [shape: f32[13,512], index: 1, kind: input, shape index: {}]   ;;  %s1926_s2 = inlined_call_operand.vmem [shape: f32[1,512], index: 2, kind: input, shape index: {}]   ;;  %s1927_s3 = inlined_call_operand.hbm [shape: f32[16,512], index: 3, kind: output, shape index: {}]  }
   0x1   :  { %10 = vsyncpa [#allocation3 + $0x1], 0 }
   0x2   :  { %11 = vsyncpa [#allocation6], 0 }
   0x3   :  { %12 = vsyncpa [#allocation4], 0 }
   0x4   :  { %14 = vsyncpa [#allocation4 + $0x1], 0  ;;  %s1638_s12 = smov 0   ;;  %s1640_s13 = smov 0  }
   0x5   :  { %s1642_s14 = smov 0   ;;  %s1644_s15 = smov 0  }
   0x6 LB: > { %s1659_s16 = sadd.s32 4294967295, %s1610_s15   ;;  %s1334_s17 = sadd.s32 4294967294, %s1610_s15   ;;  %s1610_s15 = sphi %s1644_s15, %s1947_s15   ;;  %s1606_s14 = sphi %s1642_s14, %s1946_s14   ;;  %s1602_s13 = sphi %s1640_s13, %s1945_s13   ;;  %s1598_s12 = sphi %s1638_s12, %s1944_s12  }
   0x7   : > { %p40_p0 = scmp.ne.s32.totalorder %s1602_s13, %s1598_s12  ;;  %p1928_p1 = scmp.eq.s32.totalorder %s1659_s16, 0 }
   0x8   : > { %p112_p3 = scmp.eq.s32.totalorder %s1334_s17, 1  ;;  %p1335_p5 = scmp.ge.s32.totalorder %s1610_s15, 1 }
   0x9   : > { %p1668_p4 = por %p1928_p1, %p40_p0  ;;  %p119_p7 = scmp.lt.s32.totalorder %s1610_s15, 3 }
   0xa   : > { %p1673_p6 = por %p112_p3, %p40_p0  ;;  %s1612_s21 = smov [#allocation5]  }
   0xb   : > { %s1931_s18 = scalar_select %p1668_p4, 1, 0 }
   0xc   : > { %s1932_s19 = scalar_select %p1673_p6, 1, 0 }
   0xd   : > { %p1678_p8 = pnand %p1335_p5, %p119_p7  ;;  %s131_s22 = sshll.u32 %s1612_s21, 4  ;;  %s1682_s22 = int_to_ptr.vmem [resolvable:$true] %s131_s22 }
   0xe   : > { %s1694_s24 = sadd.s32 1, %s1610_s15   ;;  %s27_s25 = sadd.s32 1, %s1606_s14 }
   0xf   : > { %s1933_s20 = scalar_select %p1678_p8, 1, 0 }
  0x10   : > { %p1430_p9 = pneg %p1678_p8  ;;  %s24_s26 = ssub.s32 %s1610_s15, %s1694_s24 }
  0x11   : > { %s1482_s29 = scalar_lea.hbm %s1925_s1, 1024 }
  0x12   : > { %p1689_p11 = pnand %p1430_p9, %p1928_p1  ;;  %p1483_p12 = scmp.ne.s32.totalorder %s1925_s1, %s1482_s29 }
  0x13   : > { %p1489_p5 = scmp.lt.u32.totalorder %s1482_s29, %s1925_s1 }
  0x14   : > { %p1484_p13 = pneg %p1689_p11 }
  0x16   : > { %p1485_p0 = pnand %p1484_p13, %p1483_p12 }
  0x18   : > { %p1486_p3 = pneg %p1485_p0 }
  0x1a   : > { %p1491_p7 = pnand %p1489_p5, %p1486_p3 }
  0x1c   : > { %1494 = shalt.err (!%p1491_p7)
}
  0x1d   : > { %s1495_s7 = scalar_lea.vmem %s1682_s22, 1024  ;;  %p1503_p2 = scmp.lt.s32.totalorder %s1682_s22, %s1682_s22 }
  0x1e   : > { %p1496_p9 = scmp.ne.s32.totalorder %s1682_s22, %s1495_s7  ;;  %p1504_p6 = scmp.lt.s32.totalorder %s1495_s7, %s1495_s7 }
  0x20   : > { %p1498_p10 = pnand %p1496_p9, %p1484_p13  ;;  %p1505_p4 = por %p1504_p6, %p1503_p2 }
  0x22   : > { %p1499_p1 = pneg %p1498_p10 }
  0x24   : > { %p1506_p8 = pnand %p1505_p4, %p1499_p1 }
  0x26   : > { %1509 = shalt.err (!%p1506_p8)
}
  0x27   : > { %s1613_s8 = smov 512   ;;  %s1614_s9 = smov 32  }
  0x28   : > { %1433 = dma.hbm_to_vmem [thread:$0]  (!%p1689_p11), %s1925_s1, 1024, %s1682_s22, [#allocation6], %s1613_s8, %s1613_s8, %s1614_s9  }
  0x29   : > { %p25_p2 = scmp.eq.s32.totalorder %s24_s26, 0  ;;  %p34_p1 = scmp.ne.s32.totalorder %s1606_s14, %s1602_s13 }
  0x2a   : > { %p35_p4 = scmp.eq.s32.totalorder %s1610_s15, 0  ;;  %p1443_p6 = scmp.lt.s32.totalorder %s1610_s15, 2 }
  0x2b   : > { %s1725_s17 = scalar_select %p25_p2, %s1606_s14, %s27_s25  }
  0x2c   : > { %p36_p8 = por %p35_p4, %p34_p1  ;;  %p1935_p10 = scmp.eq.s32.totalorder %s1659_s16, 1 }
  0x2d   : > { %s148_s27 = sand.u32 1, %s1606_s14   ;;  %s1339_s28 = sshll.u32 %s1610_s15, 7 }
  0x2e   : > { %p1729_p12 = por %p1935_p10, %p34_p1  ;;  %s1338_s29 = sshll.u32 %s148_s27, 3 }
  0x2f   : > { %s1738_s4 = scalar_lea.hbm %s1924_s0, %s1339_s28  ;;  %s152_s22 = scalar_lea.vmem [#allocation2], %s1338_s29 }
  0x30   : > { %s159_s25 = sshll.u32 %s152_s22, 4  ;;  %p1740_p11 = pnand %p1443_p6, %p36_p8  ;;  %s1744_s25 = int_to_ptr.vmem [resolvable:$true] %s159_s25 }
  0x31   : > { %s149_s5 = scalar_lea.sflag [#allocation3], %s148_s27  ;;  %s1510_s6 = scalar_lea.hbm %s1738_s4, 128 }
  0x32   : > { %p1511_p13 = scmp.ne.s32.totalorder %s1738_s4, %s1510_s6  ;;  %p1512_p0 = pneg %p1740_p11 }
  0x33   : > { %s1515_s9 = scalar_lea.hbm %s1924_s0, 256  ;;  %p1516_p7 = scmp.lt.u32.totalorder %s1738_s4, %s1924_s0 }
  0x34   : > { %p1513_p3 = pnand %p1512_p0, %p1511_p13  ;;  %p1517_p9 = scmp.lt.u32.totalorder %s1515_s9, %s1510_s6 }
  0x35   : > { %p1519_p1 = scmp.lt.u32.totalorder %s1510_s6, %s1738_s4 }
  0x36   : > { %p1514_p5 = pneg %p1513_p3  ;;  %p1518_p2 = por %p1517_p9, %p1516_p7 }
  0x38   : > { %p1520_p4 = por %p1519_p1, %p1518_p2 }
  0x3a   : > { %p1521_p6 = pnand %p1520_p4, %p1514_p5 }
  0x3c   : > { %1524 = shalt.err (!%p1521_p6)
}
  0x3d   : > { %s1525_s27 = scalar_lea.vmem %s1744_s25, 128  ;;  %s1615_s28 = smov [#allocation2]  }
  0x3e   : > { %p1526_p8 = scmp.ne.s32.totalorder %s1744_s25, %s1525_s27  ;;  %s1530_s29 = sshll.u32 %s1615_s28, 4  ;;  %s1531_s29 = int_to_ptr.vmem [resolvable:$false] %s1530_s29 }
  0x3f   : > { %s1532_s23 = scalar_lea.vmem %s1531_s29, 256  ;;  %p1533_p3 = scmp.lt.s32.totalorder %s1744_s25, %s1531_s29 }
  0x40   : > { %p1528_p10 = pnand %p1526_p8, %p1512_p0  ;;  %p1534_p7 = scmp.lt.s32.totalorder %s1532_s23, %s1525_s27 }
  0x42   : > { %p1529_p13 = pneg %p1528_p10  ;;  %p1535_p9 = por %p1534_p7, %p1533_p3 }
  0x44   : > { %p1536_p2 = pnand %p1535_p9, %p1529_p13 }
  0x46   : > { %1539 = shalt.err (!%p1536_p2)
}
  0x47   : > { %1437 = dma.hbm_to_vmem [thread:$0]  (!%p1740_p11), %s1738_s4, 128, %s1744_s25, %s149_s5  }
  0x48   : > { %p1938_p5 = scmp.ne.s32.totalorder %s1933_s20, 0 }
  0x49   : > { %s1774_s30 = sand.u32 (!%p1938_p5), 1, %s1602_s13   ;;  %p1939_p0 = scmp.ne.s32.totalorder (!%p1938_p5), %s1931_s18, 0 }
  0x4a   : > { %168 = sbr.rel (%p1938_p5) target bundleno = 374 (0x176), region = 32  ;;  %s1341_s22 = sshll.u32 (!%p1938_p5), %s1774_s30, 3 }
  0x4b   : > { %s171_s6 = scalar_lea.sflag (!%p1938_p5), [#allocation3], %s1774_s30  ;;  %s174_s7 = scalar_lea.vmem (!%p1938_p5), [#allocation2], %s1341_s22 }
  0x51   : > { %1585 = dma.done.wait (%p1939_p0), %s171_s6, 128  }
  0x52   : > { %1587 = vsyncadd (%p1939_p0), %s171_s6, 4294967168  ;;  %p1940_p1 = scmp.eq.s32.totalorder %s1659_s16, 0 }
  0x54   : > { %1589 = dma.done.wait (%p1940_p1), [#allocation6], 1024   ;;  %p1941_p11 = pmov %p1940_p1 }
  0x55   : > { %v1616_v0 = vmov 0.0   ;;  %vm236_vm0 = vcmask 1044480   ;;  %v203_v1 = vld [vmem:[#allocation5 + $0x8] sm:$0xff]  ;;  %v205_v3 = vld [vmem:[#allocation5 + $0x18] sm:$0xff]  ;;  %vm232_vm1 = vcmask 105472   ;;  %v202_v8 = vld [vmem:[#allocation5] sm:$0xff] }
  0x56   : > { %1591 = vsyncadd (%p1941_p11), [#allocation6], 4294966272  ;;  %317 = vmatprep.mubr.f32.mxu0 %v1616_v0  ;;  %808 = vmatprep.mubr.f32.mxu1 %v1616_v0  ;;  %v207_v2 = vld [vmem:[#allocation5 + $0x28] sm:$0x1f]  ;;  %v249_v5 = vand.u32 4294901760, %v203_v1  ;;  %v740_v7 = vand.u32 4294901760, %v205_v3 }
  0x57   : > { %v241_v4 = vsel %vm236_vm0, %v207_v2, 0  ;;  %v209_v6 = vld [vmem:[#allocation5 + $0x38] sm:$0x1f]  ;;  %v206_v11 = vld [vmem:[#allocation5 + $0x20] sm:$0x1f]  ;;  %v251_v12 = vand.u32 4294901760, %v202_v8 }
  0x58   : > { %v253_v9 = vand.u32 4294901760, %v241_v4  ;;  %v247_v10 = vsel %vm236_vm0, %v209_v6, 0  ;;  %v204_v13 = vld [vmem:[#allocation5 + $0x10] sm:$0xff]  ;;  %v1790_v14 = vsub.f32 %v203_v1, %v249_v5  ;;  %v1792_v16 = vsub.f32 %v205_v3, %v740_v7  ;;  %s1343_s4 = sshll.u32 %s1774_s30, 5  ;;  %s1349_s25 = sshll.u32 %s1659_s16, 9 }
  0x59   : > { %v744_v15 = vand.u32 4294901760, %v247_v10  ;;  %v238_v17 = vsel %vm236_vm0, %v206_v11, 0  ;;  %v208_v18 = vld [vmem:[#allocation5 + $0x30] sm:$0x1f]  ;;  %v1799_v23 = vsub.f32 %v202_v8, %v251_v12  ;;  %v742_v27 = vand.u32 4294901760, %v204_v13  ;;  %s200_s26 = scalar_lea.vmem [#allocation7], %s1343_s4  ;;  %s1880_s10 = scalar_lea.hbm %s1927_s3, %s1349_s25 }
  0x5a   : > { %v201_v19 = vld [vmem:[%s174_s7] sm:$0xff]  ;;  %v1795_v20 = vpack.c.bf16 %v253_v9, %v249_v5  ;;  %v1797_v21 = vsub.f32 %v241_v4, %v253_v9  ;;  %v255_v22 = vand.u32 4294901760, %v238_v17  ;;  %v244_v26 = vsel %vm236_vm0, %v208_v18, 0  ;;  %s1254_s5 = sshll.u32 %s200_s26, 4  ;;  %s1240_s16 = scalar_lea.sflag [#allocation4], %s1774_s30  ;;  %s1882_s5 = int_to_ptr.vmem [resolvable:$true] %s1254_s5 }
  0x5b   : > { %v1801_v24 = vpack.c.bf16 %v744_v15, %v740_v7  ;;  %v1803_v25 = vsub.f32 %v247_v10, %v744_v15  ;;  %v746_v30 = vand.u32 4294901760, %v244_v26  ;;  %v234_v31 = vsel %vm232_vm1, %v201_v19, 0  ;;  %s1540_s11 = scalar_lea.vmem %s1882_s5, 512  ;;  %s1617_s27 = smov [#allocation7]  }
  0x5c   : > { %1351 = vmatprep.subr.bf16.mxu0 %v1795_v20  ;;  %v1807_v28 = vpack.c.bf16 %v255_v22, %v251_v12  ;;  %v1809_v29 = vsub.f32 %v238_v17, %v255_v22  ;;  %v1813_v32 = vsub.f32 %v204_v13, %v742_v27  ;;  %v1815_v33 = vand.u32 4294901760, %v234_v31  ;;  %v210_v17 = vld [vmem:[%s1926_s2] sm:$0xf]  ;;  %p1541_p4 = scmp.ne.s32.totalorder %s1882_s5, %s1540_s11  ;;  %s1544_s28 = sshll.u32 %s1617_s27, 4  ;;  %s1545_s28 = int_to_ptr.vmem [resolvable:$false] %s1544_s28 }
  0x5d   : > { %1375 = vmatprep.subr.bf16.mxu1 %v1801_v24  ;;  %v331_v34 = vand.u32 4294901760, %v1790_v14  ;;  %v343_v35 = vand.u32 4294901760, %v1797_v21  ;;  %v1820_v36 = vpack.c.bf16 %v746_v30, %v742_v27  ;;  %v1822_v37 = vsub.f32 %v244_v26, %v746_v30  ;;  %s1546_s29 = scalar_lea.vmem %s1545_s28, 1024  ;;  %p1547_p10 = scmp.lt.s32.totalorder %s1882_s5, %s1545_s28 }
  0x5e   : > { %1353 = vmatpush1.bf16.msra.mxu0 %v1807_v28  ;;  %v822_v38 = vand.u32 4294901760, %v1792_v16  ;;  %v834_v39 = vand.u32 4294901760, %v1803_v25  ;;  %v319_v40 = vsub.f32 %v234_v31, %v1815_v33  ;;  %v337_v43 = vand.u32 4294901760, %v1799_v23  ;;  %p1542_p6 = pnand %p1541_p4, %p1729_p12  ;;  %p1548_p13 = scmp.lt.s32.totalorder %s1546_s29, %s1540_s11 }
  0x5f   : > { %v332_v41 = vsub.f32 %v1790_v14, %v331_v34  ;;  %v344_v42 = vsub.f32 %v1797_v21, %v343_v35  ;;  %1377 = vmatpush1.bf16.msra.mxu1 %v1820_v36  ;;  %v349_v46 = vand.u32 4294901760, %v1809_v29  ;;  %v828_v47 = vand.u32 4294901760, %v1813_v32 }
  0x60   : > { %v823_v44 = vsub.f32 %v1792_v16, %v822_v38  ;;  %v835_v45 = vsub.f32 %v1803_v25, %v834_v39  ;;  %v320_v48 = vand.u32 4294901760, %v319_v40  ;;  %v338_v51 = vsub.f32 %v1799_v23, %v337_v43  ;;  %p1543_p8 = pneg %p1542_p6  ;;  %p1549_p3 = por %p1548_p13, %p1547_p10 }
  0x61   : > { %v333_v49 = vand.u32 4294901760, %v332_v41  ;;  %v345_v50 = vand.u32 4294901760, %v344_v42  ;;  %v350_v54 = vsub.f32 %v1809_v29, %v349_v46  ;;  %v829_v55 = vsub.f32 %v1813_v32, %v828_v47 }
  0x62   : > { %v824_v52 = vand.u32 4294901760, %v823_v44  ;;  %v836_v53 = vand.u32 4294901760, %v835_v45  ;;  %v321_v56 = vsub.f32 %v319_v40, %v320_v48  ;;  %v339_v58 = vand.u32 4294901760, %v338_v51  ;;  %p1550_p7 = pnand %p1549_p3, %p1543_p8 }
  0x63   : > { %v1354_v57 = vpack.c.bf16 %v345_v50, %v333_v49  ;;  %v840_v59 = vand.u32 4294901760, %v1822_v37  ;;  %v351_v61 = vand.u32 4294901760, %v350_v54  ;;  %v830_v63 = vand.u32 4294901760, %v829_v55 }
  0x64   : > { %v1378_v60 = vpack.c.bf16 %v836_v53, %v824_v52  ;;  %v322_v62 = vand.u32 4294901760, %v321_v56  ;;  %v1358_v2 = vpack.c.bf16 %v1797_v21, %v1790_v14  ;;  %v1382_v5 = vpack.c.bf16 %v1803_v25, %v1792_v16 }
  0x65   : > { %1355 = vmatprep.subr.bf16.mxu0 %v1354_v57  ;;  %v841_v1 = vsub.f32 %v1822_v37, %v840_v59  ;;  %v1356_v3 = vpack.c.bf16 %v351_v61, %v339_v58  ;;  %v1360_v7 = vpack.c.bf16 %v1809_v29, %v1799_v23  ;;  %v1384_v8 = vpack.c.bf16 %v1822_v37, %v1813_v32 }
  0x66   : > { %1379 = vmatprep.subr.bf16.mxu1 %v1378_v60  ;;  %323 = vmatmul.mubr.f32.vlgmr.msra.gmra.mrb[0].mxu0 %v322_v62  ;;  %v1366_v9 = vpack.c.bf16 %v343_v35, %v331_v34  ;;  %v1390_v10 = vpack.c.bf16 %v834_v39, %v822_v38  ;;  %v1368_v11 = vpack.c.bf16 %v349_v46, %v337_v43  ;;  %v212_v13 = vlaneseq }
  0x67   : > { %814 = vmatmul.mubr.f32.vlgmr.msra.gmra.mrb[0].mxu1 %v322_v62  ;;  %v842_v4 = vand.u32 4294901760, %v841_v1  ;;  %1357 = vmatpush1.bf16.msra.mxu0 %v1356_v3  ;;  %v1392_v12 = vpack.c.bf16 %v840_v59, %v828_v47 }
  0x68   : > { %413 = vmatprep.mubr.f32.mxu0 %v1616_v0  ;;  %904 = vmatprep.mubr.f32.mxu1 %v1616_v0  ;;  %v213_v14 = vshrl.u32 %v212_v13, 7 }
  0x69   : > { %v1380_v6 = vpack.c.bf16 %v842_v4, %v830_v63  ;;  %1359 = vmatprep.subr.bf16.mxu0 %v1358_v2 }
  0x6a   : > { %v214_v15 = vsub.s32 0, %v213_v14  ;;  %v222_v16 = vsub.s32 2, %v213_v14  ;;  %v218_v18 = vsub.s32 1, %v213_v14  ;;  %v226_v19 = vsub.s32 3, %v213_v14 }
  0x6b   : > { %1381 = vmatpush1.bf16.msra.mxu1 %v1380_v6 }
  0x6c   : > { %1383 = vmatprep.subr.bf16.mxu1 %v1382_v5  ;;  %v223_v21 = vrot.slane %v210_v17, %v222_v16  ;;  %v219_v22 = vrot.slane %v210_v17, %v218_v18 }
  0x6e   : > { %415 = vmatmul.mubr.f32.vlgmr.msra.gmra.mrb[0].mxu0 %v1815_v33 }
  0x6f   : > { %906 = vmatmul.mubr.f32.vlgmr.msra.gmra.mrb[0].mxu1 %v1815_v33  ;;  %1361 = vmatpush1.bf16.msra.mxu0 %v1360_v7 }
  0x70   : > { %1385 = vmatpush1.bf16.msra.mxu1 %v1384_v8  ;;  %493 = vmatprep.mubr.f32.mxu0 %v1616_v0 }
  0x71   : > { %984 = vmatprep.mubr.f32.mxu1 %v1616_v0  ;;  %1363 = vmatprep.subr.bf16.mxu0 %v1795_v20 }
  0x72   : > { %1387 = vmatprep.subr.bf16.mxu1 %v1801_v24 }
  0x76   : > { %496 = vmatmul.mubr.f32.vlgmr.msra.gmra.mrb[0].mxu0 %v319_v40 }
  0x77   : > { %987 = vmatmul.mubr.f32.vlgmr.msra.gmra.mrb[0].mxu1 %v319_v40  ;;  %1365 = vmatpush1.bf16.msra.mxu0 %v1807_v28 }
  0x78   : > { %1389 = vmatpush1.bf16.msra.mxu1 %v1820_v36  ;;  %570 = vmatprep.mubr.f32.mxu0 %v1616_v0 }
  0x79   : > { %1061 = vmatprep.mubr.f32.mxu1 %v1616_v0  ;;  %1367 = vmatprep.subr.bf16.mxu0 %v1366_v9 }
  0x7a   : > { %1391 = vmatprep.subr.bf16.mxu1 %v1390_v10 }
  0x7e   : > { %574 = vmatmul.mubr.f32.vlgmr.msra.gmra.mrb[0].mxu0 %v320_v48 }
  0x7f   : > { %1065 = vmatmul.mubr.f32.vlgmr.msra.gmra.mrb[0].mxu1 %v320_v48  ;;  %1369 = vmatpush1.bf16.msra.mxu0 %v1368_v11 }
  0x80   : > { %1393 = vmatpush1.bf16.msra.mxu1 %v1392_v12  ;;  %656 = vmatprep.mubr.f32.mxu0 %v1616_v0 }
  0x81   : > { %1147 = vmatprep.mubr.f32.mxu1 %v1616_v0  ;;  %1371 = vmatprep.subr.bf16.mxu0 %v1795_v20  ;;  %v215_v20 = vrot.slane %v210_v17, %v214_v15 }
  0x82   : > { %1395 = vmatprep.subr.bf16.mxu1 %v1801_v24 }
  0x86   : > { %658 = vmatmul.mubr.f32.vlgmr.msra.gmra.mrb[0].mxu0 %v1815_v33 }
  0x87   : > { %1149 = vmatmul.mubr.f32.vlgmr.msra.gmra.mrb[0].mxu1 %v1815_v33  ;;  %1373 = vmatpush1.bf16.msra.mxu0 %v1807_v28 }
  0x88   : > { %1397 = vmatpush1.bf16.msra.mxu1 %v1820_v36  ;;  %732 = vmatprep.mubr.f32.mxu0 %v1616_v0 }
  0x89   : > { %1223 = vmatprep.mubr.f32.mxu1 %v1616_v0  ;;  %v227_v0 = vrot.slane %v210_v17, %v226_v19 }
  0x8e   : > { %734 = vmatmul.mubr.f32.vlgmr.msra.gmra.mrb[0].mxu0 %v1815_v33 }
  0x8f   : > { %1225 = vmatmul.mubr.f32.vlgmr.msra.gmra.mrb[0].mxu1 %v1815_v33 }
 0x161   : > { %v735_v23 = vpop.f32.mrb[0].mxu0 }
 0x162   : > { %v1226_v24 = vpop.f32.mrb[0].mxu1  ;;  %v1398_v25 = vadd.f32 %v735_v23, %v215_v20  ;;  %v737_v27 = vpop.f32.mrb[1].mxu0 }
 0x163   : > { %v1400_v26 = vadd.f32 %v1226_v24, %v223_v21  ;;  %v1228_v28 = vpop.f32.mrb[1].mxu1  ;;  %v1399_v29 = vadd.f32 %v737_v27, %v219_v22 }
 0x164   : > { %v1401_v30 = vadd.f32 %v1228_v28, %v227_v0  ;;  %v1231_v31 = vmax.f32 %v1398_v25, 0.0 }
 0x165   : > { %v1233_v32 = vmax.f32 %v1400_v26, 0.0  ;;  %v1232_v33 = vmax.f32 %v1399_v29, 0.0 }
 0x166   : > { %v1234_v34 = vmax.f32 %v1401_v30, 0.0  ;;  %1235 = vst [vmem:[%s200_s26] sm:$0xff] %v1231_v31 }
 0x167   : > { %1237 = vst [vmem:[%s200_s26 + $0x10] sm:$0xff] %v1233_v32  ;;  %1236 = vst [vmem:[%s200_s26 + $0x8] sm:$0xff] %v1232_v33 }
 0x168   : > { %1238 = vst [vmem:[%s200_s26 + $0x18] sm:$0xff] %v1234_v34 }
 0x169   : > { %1553 = shalt.err (!%p1550_p7)
}
 0x16a   : > { %s1554_s23 = scalar_lea.hbm %s1880_s10, 512  ;;  %s1558_s6 = scalar_lea.hbm %s1927_s3, 1024 }
 0x16b   : > { %p1555_p9 = scmp.ne.s32.totalorder %s1880_s10, %s1554_s23  ;;  %p1559_p0 = scmp.lt.u32.totalorder %s1880_s10, %s1927_s3 }
 0x16c   : > { %p1560_p1 = scmp.lt.u32.totalorder %s1558_s6, %s1554_s23  ;;  %p1562_p4 = scmp.lt.u32.totalorder %s1554_s23, %s1880_s10 }
 0x16d   : > { %p1556_p2 = pnand %p1555_p9, %p1729_p12 }
 0x16e   : > { %p1561_p11 = por %p1560_p1, %p1559_p0 }
 0x16f   : > { %p1557_p5 = pneg %p1556_p2 }
 0x170   : > { %p1563_p6 = por %p1562_p4, %p1561_p11 }
 0x172   : > { %p1564_p8 = pnand %p1563_p6, %p1557_p5 }
 0x174   : > { %1567 = shalt.err (!%p1564_p8)
}
 0x175   : > { %1428 = dma.vmem_to_hbm [thread:$0]  (%p1729_p12), %s1882_s5, 512, %s1880_s10, %s1240_s16  }
 0x176 PF: > { %s1266_s20 = sand.u32 1, %s1598_s12   ;;  %p1942_p10 = scmp.ne.s32.totalorder %s1932_s19, 0 }
 0x177   : > { %p1943_p13 = scmp.ge.s32.totalorder %s1610_s15, 2  ;;  %s1267_s4 = scalar_lea.sflag [#allocation4], %s1266_s20 }
 0x179   : > { %p1439_p3 = pnand %p1943_p13, %p1942_p10 }
 0x17b   : > { %1593 = dma.done.wait (!%p1439_p3), %s1267_s4, 512  }
 0x17c   : > { %1595 = vsyncadd (!%p1439_p3), %s1267_s4, 4294966784  ;;  %p17_p7 = scmp.ge.s32.totalorder %s1694_s24, 4   ;;  %s1944_s12 = smov %s1602_s13 }
 0x17d   : > { %s1945_s13 = smov %s1606_s14  ;;  %s1946_s14 = smov %s1725_s17 }
 0x17e   : > { %s1947_s15 = smov %s1694_s24  ;;  %19 = sbr.rel (!%p17_p7) target bundleno = 6 (0x6), region = 81 }
 0x185   :  { %1272 = vsyncpa [#allocation3], 1 }
 0x186   :  { %1274 = vsyncpa [#allocation3 + $0x1], 1 }
 0x187   :  { %1275 = vsyncpa [#allocation6], 1 }
 0x188   :  { %1276 = vsyncpa [#allocation4], 1 }
 0x189   :  { %1278 = vsyncpa [#allocation4 + $0x1], 1 }

</bundles_post_ra>
